<compile_context>
chip_gen: v6e
topology: v6e:2x2x1
jax: 0.10.0
libtpu: 0.0.40
codegen_flags: <defaults>
</compile_context>

<pallas_src>
import math

import jax
import jax.numpy as jnp
from jax.experimental import pallas as pl
from jax.experimental.pallas import tpu as pltpu

H1 = 128          # affine1 width
H2 = 64           # affine2 width (logical)
H2_PAD = 128      # lane-dense padded width of affine2 / head contraction dim
HEAD_PAD = 128    # lane-dense padded width of the action_mean head


def _round_up(x, m):
    return ((x + m - 1) // m) * m


# -----------------------------------------------------------------------------
# Kernel: one batch tile of the forward pass.  Weights are VMEM-resident
# (index_map always (0, 0)); only the state tile and mean tile stream.
# -----------------------------------------------------------------------------
def policy_kernel(x_ref, w1_ref, b1_ref, w2_ref, b2_ref, w3_ref, b3_ref, mean_ref):
    x = x_ref[...]                                              # (TB, S) bf16

    # affine1 + tanh   (bf16 MXU inputs, f32 accumulate, f32 tanh)
    h1 = jnp.tanh(
        jnp.dot(x, w1_ref[...], preferred_element_type=jnp.float32) + b1_ref[...]
    )
    # affine2 + tanh   (H2 padded to 128 lanes; zero cols stay exactly 0 after tanh)
    h2 = jnp.tanh(
        jnp.dot(h1.astype(jnp.bfloat16), w2_ref[...],
                preferred_element_type=jnp.float32) + b2_ref[...]
    )
    # action_mean head (padded to 128 lanes -> single unmasked lane-dense store)
    mean = (
        jnp.dot(h2.astype(jnp.bfloat16), w3_ref[...],
                preferred_element_type=jnp.float32) + b3_ref[...]
    )
    mean_ref[...] = mean.astype(mean_ref.dtype)


# -----------------------------------------------------------------------------
# One-time parameter preprocessing (off the hot path):
#   * pad H2 -> 128 and the head -> 128 lanes (zero rows/cols, exact)
#   * cast weights to bf16 (biases stay f32)
# -----------------------------------------------------------------------------
def prepare_params(params):
    w1, b1, w2, b2, w3, b3, log_std = params
    A = w3.shape[1]

    w2p = jnp.zeros((H1, H2_PAD), jnp.float32).at[:, :H2].set(w2)
    b2p = jnp.zeros((1, H2_PAD), jnp.float32).at[:, :H2].set(b2)
    w3p = jnp.zeros((H2_PAD, HEAD_PAD), jnp.float32).at[:H2, :A].set(w3)
    b3p = jnp.zeros((1, HEAD_PAD), jnp.float32).at[:, :A].set(b3)

    return {
        "w1": w1.astype(jnp.bfloat16), "b1": b1,
        "w2": w2p.astype(jnp.bfloat16), "b2": b2p,
        "w3": w3p.astype(jnp.bfloat16), "b3": b3p,
        "log_std": log_std,
        "action_size": A,
        "state_size": w1.shape[0],
    }


def policy_forward(state, prepped, *, num_batch_tiles=None, max_tile_rows=8192):
    """Wrapper calling pallas_call.  state: (B, state_size) f32.

    Returns (action_mean, action_log_std, action_std), matching the PyTorch module.

    num_batch_tiles: leave None for a single grid step (typical rollout batches);
    set to 2 on v7x with large B so the batch axis shards across both TensorCores.
    """
    B, S = state.shape
    A = prepped["action_size"]

    # --- batch tiling: pad B to a multiple of 8 FIRST, then choose tiles --------
    B8 = _round_up(B, 8)
    if num_batch_tiles is None:
        num_batch_tiles = max(1, pl.cdiv(B8, max_tile_rows))
    num_batch_tiles = max(1, int(num_batch_tiles))
    TB = _round_up(pl.cdiv(B8, num_batch_tiles), 8)
    B_pad = TB * num_batch_tiles
    grid = (num_batch_tiles,)

    state_bf16 = state.astype(jnp.bfloat16)
    if B_pad != B:
        state_p = jnp.zeros((B_pad, S), jnp.bfloat16).at[:B].set(state_bf16)
    else:
        state_p = state_bf16

    # Weights/biases: index_map always returns block (0, 0) -> VMEM-resident.
    resident = lambda shp: pl.BlockSpec(shp, lambda i: (0, 0))

    cost = pl.CostEstimate(
        flops=2 * B_pad * (S * H1 + H1 * H2_PAD + H2_PAD * HEAD_PAD),
        transcendentals=B_pad * (H1 + H2_PAD),
        bytes_accessed=(2 * B_pad * S                       # bf16 state in
                        + 2 * (S * H1 + H1 * H2_PAD + H2_PAD * HEAD_PAD)  # bf16 weights
                        + 4 * (H1 + H2_PAD + HEAD_PAD)      # f32 biases
                        + 4 * B_pad * HEAD_PAD),            # f32 mean out
    )

    # Only raise the scoped-VMEM limit when a big tile actually needs it.
    est_vmem = (2 * TB * S * 2                 # double-buffered bf16 state tile
                + 2 * TB * HEAD_PAD * 4        # double-buffered f32 mean tile
                + 2 * (S * H1 + H1 * H2_PAD + H2_PAD * HEAD_PAD)   # bf16 weights
                + 4 * (H1 + H2_PAD + HEAD_PAD))                    # f32 biases
    cp_kwargs = dict(dimension_semantics=("parallel",))   # v7x: shard batch over 2 TCs
    if est_vmem > 16 * 1024 * 1024:
        cp_kwargs["vmem_limit_bytes"] = min(int(est_vmem * 5 // 4), 64 * 1024 * 1024)

    mean_pad = pl.pallas_call(
        policy_kernel,
        out_shape=jax.ShapeDtypeStruct((B_pad, HEAD_PAD), jnp.float32),
        grid=grid,
        in_specs=[
            pl.BlockSpec((TB, S), lambda i: (i, 0)),             # state tile (streamed)
            resident((S, H1)), resident((1, H1)),                # affine1
            resident((H1, H2_PAD)), resident((1, H2_PAD)),       # affine2 (padded)
            resident((H2_PAD, HEAD_PAD)), resident((1, HEAD_PAD)),  # action_mean head (padded)
        ],
        out_specs=pl.BlockSpec((TB, HEAD_PAD), lambda i: (i, 0)),
        compiler_params=pltpu.CompilerParams(**cp_kwargs),
        cost_estimate=cost,
    )(state_p, prepped["w1"], prepped["b1"], prepped["w2"], prepped["b2"],
      prepped["w3"], prepped["b3"])

    # slice back to valid rows / columns
    mean = mean_pad[:B, :A]

    # log_std / std depend only on the (1, A) parameter: compute in the wrapper.
    log_std_b = jnp.broadcast_to(prepped["log_std"], mean.shape)
    std = jnp.exp(log_std_b)
    return mean, log_std_b, std


def init_params(key, state_size, action_size):
    """Deterministic init mirroring nn.Linear defaults (U[-1/sqrt(fan_in), 1/sqrt(fan_in)]),
    with the PyTorch module's post-init tweaks on the action_mean head."""
    ks = jax.random.split(key, 6)

    def linear(kw, kb, fan_in, fan_out):
        bound = 1.0 / math.sqrt(fan_in)
        w = jax.random.uniform(kw, (fan_in, fan_out), jnp.float32, -bound, bound)
        b = jax.random.uniform(kb, (1, fan_out), jnp.float32, -bound, bound)
        return w, b

    w1, b1 = linear(ks[0], ks[1], state_size, H1)
    w2, b2 = linear(ks[2], ks[3], H1, H2)
    w3, b3 = linear(ks[4], ks[5], H2, action_size)
    w3 = w3 * 0.1          # self.action_mean.weight.data.mul_(0.1)
    b3 = b3 * 0.0          # self.action_mean.bias.data.mul_(0.0)
    log_std = jnp.zeros((1, action_size), jnp.float32)  # nn.Parameter(torch.zeros(1, A))
    return (w1, b1, w2, b2, w3, b3, log_std)


def reference_forward(state, params, *, bf16=False):
    """Pure-JAX reference.  bf16=True mirrors the kernel's mixed-precision recipe."""
    w1, b1, w2, b2, w3, b3, log_std = params
    if bf16:
        cast = lambda a: a.astype(jnp.bfloat16)
        x = cast(state)
        h1 = jnp.tanh(jnp.dot(x, cast(w1), preferred_element_type=jnp.float32) + b1)
        h2 = jnp.tanh(jnp.dot(cast(h1), cast(w2), preferred_element_type=jnp.float32) + b2)
        mean = jnp.dot(cast(h2), cast(w3), preferred_element_type=jnp.float32) + b3
    else:
        h1 = jnp.tanh(state @ w1 + b1)
        h2 = jnp.tanh(h1 @ w2 + b2)
        mean = h2 @ w3 + b3
    log_std_b = jnp.broadcast_to(log_std, mean.shape)
    return mean, log_std_b, jnp.exp(log_std_b)


if __name__ == "__main__":
    # BipedalWalker-like sizes: state_size=24, action_size=4; small batch of 8.
    batch, state_size, action_size = 8, 24, 4

    key = jax.random.PRNGKey(0)
    k_params, k_state = jax.random.split(key)
    params = init_params(k_params, state_size, action_size)
    prepped = prepare_params(params)
    state = jax.random.normal(k_state, (batch, state_size), dtype=jnp.float32)

    mean, log_std, std = jax.block_until_ready(policy_forward(state, prepped))

    # correctness check vs a bf16-faithful pure-JAX reference (tight tolerance)
    ref_mean, ref_log_std, ref_std = reference_forward(state, params, bf16=True)
    assert jnp.allclose(mean, ref_mean, atol=1e-3, rtol=1e-3)
    assert jnp.allclose(log_std, ref_log_std, atol=1e-6)
    assert jnp.allclose(std, ref_std, atol=1e-6)
    # sanity vs the full-f32 reference (loose tolerance for bf16 matmul inputs)
    f32_mean, _, _ = reference_forward(state, params, bf16=False)
    assert jnp.allclose(mean, f32_mean, atol=5e-2, rtol=5e-2)
    assert mean.shape == (batch, action_size)
    assert log_std.shape == (batch, action_size)
    assert std.shape == (batch, action_size)

    # batch that needs padding: now pads 300 -> 304 rows, single grid step
    big_state = jax.random.normal(jax.random.PRNGKey(1), (300, state_size), jnp.float32)
    bm, bl, bs = jax.block_until_ready(policy_forward(big_state, prepped))
    rm, rl, rs = reference_forward(big_state, params, bf16=True)
    assert jnp.allclose(bm, rm, atol=1e-3, rtol=1e-3)
    assert jnp.allclose(bs, rs, atol=1e-6)
    assert bm.shape == (300, action_size)

    # exercise the multi-tile path (what you would use on v7x to engage both TCs)
    bm2, _, _ = jax.block_until_ready(
        policy_forward(big_state, prepped, num_batch_tiles=2))
    assert jnp.allclose(bm2, rm, atol=1e-3, rtol=1e-3)

    print("KERNEL_OK")
</pallas_src>

<mosaic_0001>
module attributes {stable_mosaic.version = 11 : i64} {
  func.func @policy_kernel(%arg0: i32, %arg1: memref<8x24xbf16, #tpu.memory_space<vmem>>, %arg2: memref<24x128xbf16, #tpu.memory_space<vmem>>, %arg3: memref<1x128xf32, #tpu.memory_space<vmem>>, %arg4: memref<128x128xbf16, #tpu.memory_space<vmem>>, %arg5: memref<1x128xf32, #tpu.memory_space<vmem>>, %arg6: memref<128x128xbf16, #tpu.memory_space<vmem>>, %arg7: memref<1x128xf32, #tpu.memory_space<vmem>>, %arg8: memref<8x128xf32, #tpu.memory_space<vmem>>) attributes {dimension_semantics = [#tpu.dimension_semantics<parallel>], iteration_bounds = array<i64: 1>, scalar_prefetch = 0 : i64, scratch_operands = 0 : i64, tpu.core_type = #tpu.core_type<tc>, window_params = [{transform_indices = @transform_0, window_bounds = array<i64: 8, 24>}, {pipeline_mode = #tpu.pipeline_mode<synchronous>, transform_indices = @transform_1, window_bounds = array<i64: 24, 128>}, {pipeline_mode = #tpu.pipeline_mode<synchronous>, transform_indices = @transform_2, window_bounds = array<i64: 1, 128>}, {pipeline_mode = #tpu.pipeline_mode<synchronous>, transform_indices = @transform_3, window_bounds = array<i64: 128, 128>}, {pipeline_mode = #tpu.pipeline_mode<synchronous>, transform_indices = @transform_4, window_bounds = array<i64: 1, 128>}, {pipeline_mode = #tpu.pipeline_mode<synchronous>, transform_indices = @transform_5, window_bounds = array<i64: 128, 128>}, {pipeline_mode = #tpu.pipeline_mode<synchronous>, transform_indices = @transform_6, window_bounds = array<i64: 1, 128>}, {transform_indices = @transform_7, window_bounds = array<i64: 8, 128>}]} {
    %c0 = arith.constant 0 : index
    %c0_0 = arith.constant 0 : index
    %0 = vector.load %arg1[%c0, %c0_0] : memref<8x24xbf16, #tpu.memory_space<vmem>>, vector<8x24xbf16>
    %c0_1 = arith.constant 0 : index
    %c0_2 = arith.constant 0 : index
    %1 = vector.load %arg2[%c0_1, %c0_2] : memref<24x128xbf16, #tpu.memory_space<vmem>>, vector<24x128xbf16>
    %cst = arith.constant dense<0.000000e+00> : vector<8x128xf32>
    %2 = tpu.matmul %0, %1, %cst {dimension_numbers = #tpu.dot_dimension_numbers<[1], [0], [0], [1], [0, 0, 1, 1], [], []>} : vector<8x24xbf16>, vector<24x128xbf16>, vector<8x128xf32> -> vector<8x128xf32>
    %c0_3 = arith.constant 0 : index
    %c0_4 = arith.constant 0 : index
    %3 = vector.load %arg3[%c0_3, %c0_4] : memref<1x128xf32, #tpu.memory_space<vmem>>, vector<1x128xf32>
    %4 = vector.broadcast %3 : vector<1x128xf32> to vector<8x128xf32>
    %5 = arith.addf %2, %4 : vector<8x128xf32>
    %6 = math.tanh %5 : vector<8x128xf32>
    %7 = arith.truncf %6 : vector<8x128xf32> to vector<8x128xbf16>
    %c0_5 = arith.constant 0 : index
    %c0_6 = arith.constant 0 : index
    %8 = vector.load %arg4[%c0_5, %c0_6] : memref<128x128xbf16, #tpu.memory_space<vmem>>, vector<128x128xbf16>
    %cst_7 = arith.constant dense<0.000000e+00> : vector<8x128xf32>
    %9 = tpu.matmul %7, %8, %cst_7 {dimension_numbers = #tpu.dot_dimension_numbers<[1], [0], [0], [1], [0, 0, 1, 1], [], []>} : vector<8x128xbf16>, vector<128x128xbf16>, vector<8x128xf32> -> vector<8x128xf32>
    %c0_8 = arith.constant 0 : index
    %c0_9 = arith.constant 0 : index
    %10 = vector.load %arg5[%c0_8, %c0_9] : memref<1x128xf32, #tpu.memory_space<vmem>>, vector<1x128xf32>
    %11 = vector.broadcast %10 : vector<1x128xf32> to vector<8x128xf32>
    %12 = arith.addf %9, %11 : vector<8x128xf32>
    %13 = math.tanh %12 : vector<8x128xf32>
    %14 = arith.truncf %13 : vector<8x128xf32> to vector<8x128xbf16>
    %c0_10 = arith.constant 0 : index
    %c0_11 = arith.constant 0 : index
    %15 = vector.load %arg6[%c0_10, %c0_11] : memref<128x128xbf16, #tpu.memory_space<vmem>>, vector<128x128xbf16>
    %cst_12 = arith.constant dense<0.000000e+00> : vector<8x128xf32>
    %16 = tpu.matmul %14, %15, %cst_12 {dimension_numbers = #tpu.dot_dimension_numbers<[1], [0], [0], [1], [0, 0, 1, 1], [], []>} : vector<8x128xbf16>, vector<128x128xbf16>, vector<8x128xf32> -> vector<8x128xf32>
    %c0_13 = arith.constant 0 : index
    %c0_14 = arith.constant 0 : index
    %17 = vector.load %arg7[%c0_13, %c0_14] : memref<1x128xf32, #tpu.memory_space<vmem>>, vector<1x128xf32>
    %18 = vector.broadcast %17 : vector<1x128xf32> to vector<8x128xf32>
    %19 = arith.addf %16, %18 : vector<8x128xf32>
    %c0_15 = arith.constant 0 : index
    %c0_16 = arith.constant 0 : index
    %20 = vector.load %arg8[%c0_15, %c0_16] : memref<8x128xf32, #tpu.memory_space<vmem>>, vector<8x128xf32>
    tpu.vector_store %arg8[%c0_15, %c0_16], %19 {strides = array<i32>} : memref<8x128xf32, #tpu.memory_space<vmem>>, vector<8x128xf32>,
    return
  }
  func.func @transform_0(%arg0: i32) -> (i32, i32) {
    %c0_i32 = arith.constant 0 : i32
    %c0_i32_0 = arith.constant 0 : i32
    return %arg0, %c0_i32 : i32, i32
  }
  func.func @transform_1(%arg0: i32) -> (i32, i32) {
    %c0_i32 = arith.constant 0 : i32
    %c0_i32_0 = arith.constant 0 : i32
    %c0_i32_1 = arith.constant 0 : i32
    return %c0_i32, %c0_i32_0 : i32, i32
  }
  func.func @transform_2(%arg0: i32) -> (i32, i32) {
    %c0_i32 = arith.constant 0 : i32
    %c0_i32_0 = arith.constant 0 : i32
    %c0_i32_1 = arith.constant 0 : i32
    return %c0_i32, %c0_i32_0 : i32, i32
  }
  func.func @transform_3(%arg0: i32) -> (i32, i32) {
    %c0_i32 = arith.constant 0 : i32
    %c0_i32_0 = arith.constant 0 : i32
    %c0_i32_1 = arith.constant 0 : i32
    return %c0_i32, %c0_i32_0 : i32, i32
  }
  func.func @transform_4(%arg0: i32) -> (i32, i32) {
    %c0_i32 = arith.constant 0 : i32
    %c0_i32_0 = arith.constant 0 : i32
    %c0_i32_1 = arith.constant 0 : i32
    return %c0_i32, %c0_i32_0 : i32, i32
  }
  func.func @transform_5(%arg0: i32) -> (i32, i32) {
    %c0_i32 = arith.constant 0 : i32
    %c0_i32_0 = arith.constant 0 : i32
    %c0_i32_1 = arith.constant 0 : i32
    return %c0_i32, %c0_i32_0 : i32, i32
  }
  func.func @transform_6(%arg0: i32) -> (i32, i32) {
    %c0_i32 = arith.constant 0 : i32
    %c0_i32_0 = arith.constant 0 : i32
    %c0_i32_1 = arith.constant 0 : i32
    return %c0_i32, %c0_i32_0 : i32, i32
  }
  func.func @transform_7(%arg0: i32) -> (i32, i32) {
    %c0_i32 = arith.constant 0 : i32
    %c0_i32_0 = arith.constant 0 : i32
    return %arg0, %c0_i32 : i32, i32
  }
}

</mosaic_0001>

<bundles_post_ra>
// kernel: tpu_custom_call.1
= control target key start
LH: loop header
LB: loop body
LE: loop exit
PB: predicated region body
PF: predicated region fallthrough
CT: control target
= control target key end

     0   :  { %12 = vsyncpa [#allocation3], 0  ;;  %s729_s0 = inlined_call_operand.hbm [shape: bf16[8,24], index: 0, kind: input, shape index: {}]   ;;  %s730_s1 = inlined_call_operand.hbm [shape: bf16[24,128], index: 1, kind: input, shape index: {}]   ;;  %s731_s2 = inlined_call_operand.vmem [shape: f32[1,128], index: 2, kind: input, shape index: {}]   ;;  %s732_s3 = inlined_call_operand.hbm [shape: bf16[128,128], index: 3, kind: input, shape index: {}]   ;;  %s733_s4 = inlined_call_operand.vmem [shape: f32[1,128], index: 4, kind: input, shape index: {}]   ;;  %s734_s5 = inlined_call_operand.hbm [shape: bf16[128,128], index: 5, kind: input, shape index: {}]   ;;  %s735_s6 = inlined_call_operand.vmem [shape: f32[1,128], index: 6, kind: input, shape index: {}]   ;;  %s736_s7 = inlined_call_operand.hbm [shape: f32[8,128], index: 7, kind: output, shape index: {}]  }
   0x1   :  { %13 = vsyncpa [#allocation6], 0 }
   0x2   :  { %14 = vsyncpa [#allocation9], 0 }
   0x3   :  { %15 = vsyncpa [#allocation4], 0  ;;  %s623_s24 = smov [#allocation5]  }
   0x4   :  { %s31_s25 = sshll.u32 %s623_s24, 4  ;;  %s32_s25 = int_to_ptr.vmem [resolvable:$true] %s31_s25 }
   0x5   :  { %s523_s26 = scalar_lea.vmem %s32_s25, 192  ;;  %p528_p1 = scmp.lt.s32.totalorder %s32_s25, %s32_s25 }
   0x6   :  { %p524_p0 = scmp.ne.s32.totalorder %s32_s25, %s523_s26  ;;  %p529_p2 = scmp.lt.s32.totalorder %s523_s26, %s523_s26 }
   0x8   :  { %p530_p3 = por %p529_p2, %p528_p1 }
   0xa   :  { %p531_p4 = pnand %p530_p3, %p524_p0 }
   0xc   :  { %534 = shalt.err (!%p531_p4)
}
   0xd   :  { %s624_s27 = smov 64   ;;  %s625_s28 = smov 4  }
   0xe   :  { %37 = dma.hbm_to_vmem [thread:$0]  %s730_s1, 192, %s32_s25, [#allocation6], %s624_s27, %s624_s27, %s625_s28  }
   0xf   :  { %s626_s8 = smov [#allocation2]   ;;  %s627_s10 = smov [#allocation7]  }
  0x10   :  { %s22_s9 = sshll.u32 %s626_s8, 4  ;;  %s45_s11 = sshll.u32 %s627_s10, 4  ;;  %s23_s9 = int_to_ptr.vmem [resolvable:$true] %s22_s9  ;;  %s46_s11 = int_to_ptr.vmem [resolvable:$true] %s45_s11 }
  0x11   :  { %s543_s12 = scalar_lea.vmem %s23_s9, 64  ;;  %p548_p6 = scmp.lt.s32.totalorder %s23_s9, %s23_s9 }
  0x12   :  { %p544_p5 = scmp.ne.s32.totalorder %s23_s9, %s543_s12  ;;  %p549_p7 = scmp.lt.s32.totalorder %s543_s12, %s543_s12 }
  0x14   :  { %p550_p8 = por %p549_p7, %p548_p6 }
  0x16   :  { %p551_p9 = pnand %p550_p8, %p544_p5 }
  0x18   :  { %554 = shalt.err (!%p551_p9)
}
  0x19   :  { %25 = dma.hbm_to_vmem [thread:$0]  %s729_s0, 64, %s23_s9, [#allocation3]  }
  0x1a   :  { %s563_s15 = scalar_lea.vmem %s46_s11, 1024  ;;  %p568_p11 = scmp.lt.s32.totalorder %s46_s11, %s46_s11 }
  0x1b   :  { %p564_p10 = scmp.ne.s32.totalorder %s46_s11, %s563_s15  ;;  %p569_p12 = scmp.lt.s32.totalorder %s563_s15, %s563_s15 }
  0x1d   :  { %p570_p13 = por %p569_p12, %p568_p11 }
  0x1f   :  { %p571_p0 = pnand %p570_p13, %p564_p10 }
  0x21   :  { %574 = shalt.err (!%p571_p0)
}
  0x22   :  { %51 = dma.hbm_to_vmem [thread:$0]  %s732_s3, 1024, %s46_s11, [#allocation6], %s624_s27, %s624_s27, %s625_s28  }
  0x23   :  { %s628_s17 = smov [#allocation8]  }
  0x24   :  { %s59_s18 = sshll.u32 %s628_s17, 4  ;;  %s60_s18 = int_to_ptr.vmem [resolvable:$true] %s59_s18 }
  0x25   :  { %s583_s19 = scalar_lea.vmem %s60_s18, 1024  ;;  %p588_p2 = scmp.lt.s32.totalorder %s60_s18, %s60_s18 }
  0x26   :  { %p584_p1 = scmp.ne.s32.totalorder %s60_s18, %s583_s19  ;;  %p589_p3 = scmp.lt.s32.totalorder %s583_s19, %s583_s19 }
  0x28   :  { %p590_p4 = por %p589_p3, %p588_p2 }
  0x2a   :  { %p591_p5 = pnand %p590_p4, %p584_p1 }
  0x2c   :  { %594 = shalt.err (!%p591_p5)
}
  0x2d   :  { %65 = dma.hbm_to_vmem [thread:$0]  %s734_s5, 1024, %s60_s18, [#allocation9], %s624_s27, %s624_s27, %s625_s28  }
  0x2e   :  { %615 = dma.done.wait [#allocation3], 64  }
  0x2f   :  { %616 = vsyncadd [#allocation3], 4294967232 }
  0x30   :  { %617 = dma.done.wait [#allocation6], 1216  }
  0x31   :  { %618 = vsyncadd [#allocation6], 4294966080 }
  0x32   :  { %619 = dma.done.wait [#allocation9], 1024  }
  0x33   :  { %620 = vsyncadd [#allocation9], 4294966272  ;;  %v629_v0 = vmov 0.0   ;;  %vm630_vm0 = vmmov 0   ;;  %vm105_vm1 = vcmask 1043456   ;;  %v495_v3 = vld [vmem:[#allocation7 + $0x38] sm:$0xff]  }
  0x34   :  { %436 = vmatprep.subr.bf16.mxu0 %v629_v0  ;;  %440 = vmatprep.mubr.msk.bf16.mxu0 %vm630_vm0, %v629_v0  ;;  %v493_v1 = vld [vmem:[#allocation5 + $0x8] ss:$0 sps:$4 sm:$0xff]   ;;  %v494_v4 = vld [vmem:[#allocation5] sm:$0xff]   ;;  %vm101_vm2 = vcmask 195584   ;;  %v81_v6 = vld [vmem:[#allocation2] sm:$0xf] }
  0x35   :  { %444 = vmatprep.subr.bf16.mxu1 %v629_v0  ;;  %460 = vmatprep.mubr.msk.bf16.mxu1 %vm630_vm0, %v629_v0  ;;  %v107_v2 = vsel %vm105_vm1, %v493_v1, 0  ;;  %v496_v5 = vld [vmem:[#allocation7 + $0x30] sm:$0xff]   ;;  %v497_v7 = vld [vmem:[#allocation7 + $0x28] sm:$0xff]   ;;  %v498_v8 = vld [vmem:[#allocation7 + $0x20] sm:$0xff]   ;;  %s631_s24 = smov [#allocation10]  }
  0x36   :  { %437 = vmatpush3.bf16.msra.mxu0 %v107_v2  ;;  %445 = vmatpush3.bf16.msra.mxu1 %v495_v3  ;;  %v499_v9 = vld [vmem:[#allocation7 + $0x18] sm:$0xff]   ;;  %v500_v10 = vld [vmem:[#allocation7 + $0x10] sm:$0xff]   ;;  %v501_v11 = vld [vmem:[#allocation7 + $0x8] sm:$0xff]   ;;  %s382_s25 = sshll.u32 %s631_s24, 4  ;;  %s383_s25 = int_to_ptr.vmem [resolvable:$true] %s382_s25 }
  0x37   :  { %438 = vmatprep.subr.bf16.mxu0 %v629_v0  ;;  %446 = vmatprep.subr.bf16.mxu1 %v629_v0  ;;  %v502_v12 = vld [vmem:[#allocation7] sm:$0xff]   ;;  %v503_v13 = vld [vmem:[#allocation8 + $0x38] sm:$0xff]   ;;  %v504_v14 = vld [vmem:[#allocation8 + $0x30] sm:$0xff]   ;;  %p600_p7 = scmp.lt.s32.totalorder %s383_s25, %s383_s25 }
  0x38   :  { %v505_v15 = vld [vmem:[#allocation8 + $0x28] sm:$0xff]   ;;  %v393_v16 = vld [vmem:[%s731_s2] ss:$0 sm:$0xff]  ;;  %v506_v24 = vld [vmem:[#allocation8 + $0x20] sm:$0xff]  }
  0x39   :  { %v507_v25 = vld [vmem:[#allocation8 + $0x18] sm:$0xff]   ;;  %v508_v26 = vld [vmem:[#allocation8 + $0x10] sm:$0xff]   ;;  %v509_v27 = vld [vmem:[#allocation8 + $0x8] sm:$0xff]  }
  0x3a   :  { %439 = vmatpush3.bf16.msra.mxu0 %v494_v4  ;;  %447 = vmatpush3.bf16.msra.mxu1 %v496_v5  ;;  %v510_v28 = vld [vmem:[#allocation8] sm:$0xff]   ;;  %v397_v29 = vld [vmem:[%s733_s4] ss:$0 sm:$0xff]  ;;  %s595_s4 = scalar_lea.vmem %s383_s25, 128 }
  0x3b   :  { %464 = vmatprep.subr.bf16.mxu0 %v629_v0  ;;  %448 = vmatprep.subr.bf16.mxu1 %v629_v0  ;;  %v406_v37 = vld [vmem:[%s735_s6] ss:$0 sm:$0xff]  ;;  %p596_p6 = scmp.ne.s32.totalorder %s383_s25, %s595_s4  ;;  %p601_p8 = scmp.lt.s32.totalorder %s595_s4, %s595_s4 }
  0x3d   :  { %441 = vmatmul.mubr.msk.bf16.vlgmr.msra.gmra.mxu0 %vm101_vm2, %v81_v6  ;;  %p602_p9 = por %p601_p8, %p600_p7 }
  0x3e   :  { %480 = vmatprep.mubr.msk.bf16.mxu0 %vm630_vm0, %v629_v0  ;;  %449 = vmatpush3.bf16.msra.mxu1 %v497_v7 }
  0x3f   :  { %450 = vmatprep.subr.bf16.mxu1 %v629_v0  ;;  %465 = vmatpush3.bf16.msra.mxu0 %v503_v13  ;;  %p603_p10 = pnand %p602_p9, %p596_p6 }
  0x40   :  { %466 = vmatprep.subr.bf16.mxu0 %v629_v0 }
  0x42   :  { %451 = vmatpush3.bf16.msra.mxu1 %v498_v8 }
  0x43   :  { %452 = vmatprep.subr.bf16.mxu1 %v629_v0  ;;  %467 = vmatpush3.bf16.msra.mxu0 %v504_v14 }
  0x44   :  { %468 = vmatprep.subr.bf16.mxu0 %v629_v0 }
  0x46   :  { %453 = vmatpush3.bf16.msra.mxu1 %v499_v9 }
  0x47   :  { %454 = vmatprep.subr.bf16.mxu1 %v629_v0  ;;  %469 = vmatpush3.bf16.msra.mxu0 %v505_v15 }
  0x48   :  { %470 = vmatprep.subr.bf16.mxu0 %v629_v0 }
  0x4a   :  { %455 = vmatpush3.bf16.msra.mxu1 %v500_v10 }
  0x4b   :  { %456 = vmatprep.subr.bf16.mxu1 %v629_v0  ;;  %471 = vmatpush3.bf16.msra.mxu0 %v506_v24 }
  0x4c   :  { %472 = vmatprep.subr.bf16.mxu0 %v629_v0 }
  0x4e   :  { %457 = vmatpush3.bf16.msra.mxu1 %v501_v11 }
  0x4f   :  { %458 = vmatprep.subr.bf16.mxu1 %v629_v0  ;;  %473 = vmatpush3.bf16.msra.mxu0 %v507_v25 }
  0x50   :  { %474 = vmatprep.subr.bf16.mxu0 %v629_v0 }
  0x52   :  { %459 = vmatpush3.bf16.msra.mxu1 %v502_v12 }
  0x53   :  { %475 = vmatpush3.bf16.msra.mxu0 %v508_v26 }
  0x54   :  { %476 = vmatprep.subr.bf16.mxu0 %v629_v0 }
  0x57   :  { %477 = vmatpush3.bf16.msra.mxu0 %v509_v27 }
  0x58   :  { %478 = vmatprep.subr.bf16.mxu0 %v629_v0 }
  0x5b   :  { %479 = vmatpush3.bf16.msra.mxu0 %v510_v28 }
  0xfd   :  { %v143_v17 = vpop.f32.mrf.mxu0 }
  0xfe   :  { %v144_v18 = vadd.f32 %v393_v16, %v143_v17 }
  0xff   :  { %v442_v19 = vpop.f32.mrf.mxu0 }
 0x100   :  { %511 = vtanh.f32 %v144_v18 }
 0x101   :  { %v146_v20 = vpop.f32.mrf.mxu0 }
 0x103   :  { %v443_v21 = vpop.f32.mrf.mxu0 }
 0x10d   :  { %v512_v22 = vpop.eup %511 }
 0x10e   :  { %v150_v23 = vpack.c.bf16 %v512_v22, %v512_v22 }
 0x110   :  { %461 = vmatmul.mubr.bf16.vlgmr.msra.gmra.mxu1 %v150_v23 }
 0x1d0   :  { %v256_v30 = vpop.f32.mrf.mxu1 }
 0x1d1   :  { %v257_v31 = vadd.f32 %v397_v29, %v256_v30 }
 0x1d2   :  { %v462_v32 = vpop.f32.mrf.mxu1 }
 0x1d3   :  { %513 = vtanh.f32 %v257_v31 }
 0x1d4   :  { %v259_v33 = vpop.f32.mrf.mxu1 }
 0x1d6   :  { %v463_v34 = vpop.f32.mrf.mxu1 }
 0x1e0   :  { %v514_v35 = vpop.eup %513 }
 0x1e1   :  { %v263_v36 = vpack.c.bf16 %v514_v35, %v514_v35 }
 0x1e3   :  { %481 = vmatmul.mubr.bf16.vlgmr.msra.gmra.mxu0 %v263_v36 }
 0x2a3   :  { %v369_v38 = vpop.f32.mrf.mxu0 }
 0x2a4   :  { %v370_v39 = vadd.f32 %v406_v37, %v369_v38 }
 0x2a5   :  { %v482_v40 = vpop.f32.mrf.mxu0 }
 0x2a6   :  { %375 = vst [vmem:[#allocation10] sm:$0xff] %v370_v39 }
 0x2a7   :  { %v372_v41 = vpop.f32.mrf.mxu0 }
 0x2a8   :  { %606 = shalt.err (!%p603_p10)
}
 0x2a9   :  { %385 = dma.vmem_to_hbm [thread:$0]  %s383_s25, 128, %s736_s7, [#allocation4]   ;;  %v483_v42 = vpop.f32.mrf.mxu0 }
 0x2aa   :  { %621 = dma.done.wait [#allocation4], 128  }
 0x2ab   :  { %622 = vsyncadd [#allocation4], 4294967168 }
 0x2ac   :  { %389 = vsyncpa [#allocation3], 1 }
 0x2ad   :  { %390 = vsyncpa [#allocation6], 1 }
 0x2ae   :  { %391 = vsyncpa [#allocation9], 1 }
 0x2af   :  { %392 = vsyncpa [#allocation4], 1 }

</bundles_post_ra>
